<compile_context>
chip_gen: v6e
topology: v6e:2x2x1
jax: 0.10.0
libtpu: 0.0.40
codegen_flags: <defaults>
</compile_context>

<pallas_src>
import functools

import jax
import jax.numpy as jnp
import numpy as np
from jax.experimental import pallas as pl
from jax.experimental.pallas import tpu as pltpu


def _round_up(x, m):
    return (x + m - 1) // m * m


def _cdiv(a, b):
    return -(-a // b)


def _num_tensorcores():
    """Best-effort TensorCore count (1 on v5e/v6e, 2 on v7x). Safe fallback: 1."""
    try:
        d = jax.devices()[0]
        for attr in ("num_cores", "core_count"):
            v = getattr(d, attr, None)
            if isinstance(v, int) and 1 <= v <= 8:
                return v
    except Exception:
        pass
    return 1


def _n2xdecon_kernel(coef_ref, pred_ref, targ_ref, mask_ref,
                     num_ref, den_ref, acc_sc,
                     *, H, K, Lout, Gt, separable):
    """One grid step: Gt packed groups of images, fully zero-padded in HBM.

    pred/targ/mask refs: (Gt, Hp8, Lp) f32, images live at row offset p and
    lane offset slot*slotW + p; everything else is zero (incl. gutters).
    """
    b = pl.program_id(1)
    p = (K - 1) // 2

    @pl.when(b == 0)
    def _init():
        acc_sc[0] = jnp.float32(0.0)
        acc_sc[1] = jnp.float32(0.0)

    step_num = jnp.float32(0.0)
    step_den = jnp.float32(0.0)

    for gi in range(Gt):                       # static unroll; Gt kept small
        if separable:
            # Horizontal taps (K lane shifts), 2 independent partials for ILP.
            th = [jnp.float32(0.0), jnp.float32(0.0)]
            for dj in range(K):
                col = pred_ref[gi, :, dj:dj + Lout]          # (Hp8, Lout)
                th[dj & 1] = th[dj & 1] + coef_ref[1, dj] * col
            tmp = th[0] + th[1]
            # Vertical taps (sublane offsets only).
            tv = [jnp.zeros((H, Lout), jnp.float32),
                  jnp.zeros((H, Lout), jnp.float32)]
            for di in range(K):
                tv[di & 1] = tv[di & 1] + coef_ref[0, di] * tmp[di:di + H, :]
            conv = tv[0] + tv[1]
        else:
            # General PSF: dj (lane shift) hoisted to the outer loop -> K lane
            # shifts per group; row offsets sliced from the shifted column.
            acc = [jnp.zeros((H, Lout), jnp.float32),
                   jnp.zeros((H, Lout), jnp.float32)]
            for dj in range(K):
                col = pred_ref[gi, :, dj:dj + Lout]          # (Hp8, Lout)
                for di in range(K):
                    acc[(di + dj) & 1] = (acc[(di + dj) & 1]
                                          + coef_ref[di, dj] * col[di:di + H, :])
            conv = acc[0] + acc[1]

        m = mask_ref[gi, p:p + H, p:p + Lout]                # zero in all padding
        t = targ_ref[gi, p:p + H, p:p + Lout]
        diff = (conv - t) * m                                # folded mask
        step_num = step_num + jnp.sum(diff * diff)           # XLU reduce (free slot)
        step_den = step_den + jnp.sum(m)

    acc_sc[0] = acc_sc[0] + step_num
    acc_sc[1] = acc_sc[1] + step_den

    @pl.when(b == pl.num_programs(1) - 1)
    def _finalize():
        num_ref[...] = jnp.full((1, 1, 1), acc_sc[0], dtype=jnp.float32)
        den_ref[...] = jnp.full((1, 1, 1), acc_sc[1], dtype=jnp.float32)


def _separable_factors(psf, tol=1e-6):
    """Return (2, K) f32 [column; row] factors iff psf is (numerically) exactly rank-1."""
    try:
        psf_np = np.asarray(jax.device_get(psf), dtype=np.float32)
    except Exception:            # traced PSF (e.g. under jit): use the general path
        return None
    if psf_np.ndim != 2:
        return None
    u, s, vt = np.linalg.svd(psf_np)
    if s[0] <= 0.0:
        return None
    col = u[:, 0] * np.sqrt(s[0])
    row = vt[0, :] * np.sqrt(s[0])
    recon = np.outer(col, row)
    if not np.allclose(recon, psf_np, rtol=0.0, atol=tol * np.abs(psf_np).max()):
        return None              # not exactly separable -> exact K*K path
    return np.stack([col, row]).astype(np.float32)


def n2xdecon_loss(psf, predict, target, mask, separable_factors=None):
    """predict/target/mask: (B, 1, H, W); psf: (K, K) float, odd K."""
    B, C, H, W = predict.shape
    assert C == 1, "N2XDecon operates on single-channel images"
    K = psf.shape[0]
    assert psf.shape == (K, K)
    assert K % 2 == 1, "PSF size must be odd to match Conv2d padding=(K-1)//2"
    p = (K - 1) // 2

    if separable_factors is None:
        separable_factors = _separable_factors(psf)
    separable = separable_factors is not None
    coef = (jnp.asarray(separable_factors, dtype=jnp.float32) if separable
            else jnp.asarray(psf, dtype=jnp.float32))

    # ---- lane-dense packing geometry -------------------------------------
    slot_w = W + 2 * p                                    # image + own zero gutters
    G = 1 if slot_w >= 128 else max(1, min(B, 128 // slot_w))   # images per lane group
    Lp = _round_up(G * slot_w, 128)                       # lane width (128-multiple)
    Hp8 = _round_up(H + 2 * p, 8)                         # padded rows (8-multiple)
    Lout = Lp - 2 * p                                     # conv output lane width
    NG0 = _cdiv(B, G)                                     # groups needed

    nc = max(1, min(_num_tensorcores(), 2, NG0))          # megacore split (v7x)
    bytes_per_group = Hp8 * Lp * 4
    Gt = max(1, min(8, (1 << 20) // max(1, bytes_per_group), _cdiv(NG0, nc)))
    steps = _cdiv(NG0, nc * Gt)
    NGp = nc * Gt * steps                                 # padded group count
    Bpad = NGp * G                                        # padded image count

    def pack(x):
        # (B, H, W) -> (NGp, Hp8, Lp): each image zero-padded by p on every side
        # inside its own lane slot; extra (fake) images are all-zero (mask=0).
        x = x.astype(jnp.float32)
        x = jnp.pad(x, ((0, Bpad - B), (p, Hp8 - H - p), (p, p)))
        x = x.reshape(NGp, G, Hp8, slot_w)
        x = jnp.transpose(x, (0, 2, 1, 3)).reshape(NGp, Hp8, G * slot_w)
        if Lp > G * slot_w:
            x = jnp.pad(x, ((0, 0), (0, 0), (0, Lp - G * slot_w)))
        return x

    pred_p = pack(predict[:, 0])
    targ_p = pack(target[:, 0])
    mask_p = pack(mask[:, 0])

    kernel = functools.partial(_n2xdecon_kernel, H=H, K=K, Lout=Lout, Gt=Gt,
                               separable=separable)

    img_spec = pl.BlockSpec((Gt, Hp8, Lp), lambda c, b: (c * steps + b, 0, 0))
    out_spec = pl.BlockSpec((1, 1, 1), lambda c, b: (c, 0, 0))

    # VMEM budget from actual block sizes (3 inputs x 2 pipeline buffers).
    vmem_needed = 3 * 2 * Gt * bytes_per_group + (1 << 16)
    try:
        phys_vmem = pltpu.get_tpu_info().vmem_capacity_bytes
    except Exception:
        phys_vmem = 64 * 2 ** 20
    vmem_limit = int(min(int(phys_vmem * 0.85),
                         max(32 * 2 ** 20, 2 * vmem_needed)))

    num, den = pl.pallas_call(
        kernel,
        out_shape=(jax.ShapeDtypeStruct((nc, 1, 1), jnp.float32),
                   jax.ShapeDtypeStruct((nc, 1, 1), jnp.float32)),
        grid_spec=pltpu.PrefetchScalarGridSpec(
            num_scalar_prefetch=0,
            grid=(nc, steps),
            in_specs=[
                pl.BlockSpec(memory_space=pltpu.MemorySpace.SMEM),  # PSF / factors
                img_spec,    # packed predict
                img_spec,    # packed target
                img_spec,    # packed mask
            ],
            out_specs=(out_spec, out_spec),
            scratch_shapes=[
                pltpu.SMEM((2,), jnp.float32),   # [num, den] scalar accumulators
            ],
        ),
        compiler_params=pltpu.CompilerParams(
            dimension_semantics=("parallel", "arbitrary"),
            vmem_limit_bytes=vmem_limit),
    )(coef, pred_p, targ_p, mask_p)

    # Combine per-core partial sums. (All-zero mask -> NaN, same as reference.)
    return jnp.sum(num) / jnp.sum(den)


def _reference_loss(psf, predict, target, mask):
    K = psf.shape[0]
    w = psf.reshape(1, 1, K, K)
    conv = jax.lax.conv_general_dilated(
        predict, w, window_strides=(1, 1),
        padding=[((K - 1) // 2, (K - 1) // 2)] * 2,
        dimension_numbers=("NCHW", "OIHW", "NCHW"))
    num = jnp.sum((conv * mask - target * mask) ** 2)
    den = jnp.sum(mask)
    return num / den


def _make_gaussian_psf(k):
    r = jnp.arange(k, dtype=jnp.float32) - (k - 1) / 2.0
    g = jnp.exp(-(r ** 2) / 2.0)
    psf = jnp.outer(g, g)
    return psf / jnp.sum(psf)


if __name__ == "__main__":
    B, C, H, W = 2, 1, 16, 16
    K = 5

    key = jax.random.PRNGKey(0)
    k1, k2, k3, k4 = jax.random.split(key, 4)
    predict = jax.random.normal(k1, (B, C, H, W), dtype=jnp.float32)
    target = jax.random.normal(k2, (B, C, H, W), dtype=jnp.float32)
    mask = (jax.random.uniform(k3, (B, C, H, W)) > 0.5).astype(jnp.float32)

    # Separable (Gaussian) PSF -> exercises the 2K-tap fast path.
    psf_sep = _make_gaussian_psf(K)
    loss_sep = jax.block_until_ready(n2xdecon_loss(psf_sep, predict, target, mask))
    ref_sep = jax.block_until_ready(_reference_loss(psf_sep, predict, target, mask))
    assert jnp.allclose(loss_sep, ref_sep, rtol=1e-5, atol=1e-5), (loss_sep, ref_sep)

    # Non-separable PSF -> exercises the general shift-hoisted K*K path.
    psf_gen = jax.random.uniform(k4, (K, K), dtype=jnp.float32) + 0.1
    psf_gen = psf_gen / jnp.sum(psf_gen)
    loss_gen = jax.block_until_ready(n2xdecon_loss(psf_gen, predict, target, mask))
    ref_gen = jax.block_until_ready(_reference_loss(psf_gen, predict, target, mask))
    assert jnp.allclose(loss_gen, ref_gen, rtol=1e-5, atol=1e-5), (loss_gen, ref_gen)

    print("KERNEL_OK")
</pallas_src>

<mosaic_0001>
module attributes {stable_mosaic.version = 11 : i64} {
  func.func @_n2xdecon_kernel(%arg0: i32, %arg1: i32, %arg2: memref<2x5xf32, #tpu.memory_space<smem>>, %arg3: memref<1x24x128xf32, #tpu.memory_space<vmem>>, %arg4: memref<1x24x128xf32, #tpu.memory_space<vmem>>, %arg5: memref<1x24x128xf32, #tpu.memory_space<vmem>>, %arg6: memref<1x1x1xf32, #tpu.memory_space<vmem>>, %arg7: memref<1x1x1xf32, #tpu.memory_space<vmem>>, %arg8: memref<2xf32, #tpu.memory_space<smem>>) attributes {dimension_semantics = [#tpu.dimension_semantics<parallel>, #tpu.dimension_semantics<arbitrary>], iteration_bounds = array<i64: 1, 1>, scalar_prefetch = 0 : i64, scratch_operands = 1 : i64, tpu.core_type = #tpu.core_type<tc>, window_params = [{transform_indices = @transform_0, window_bounds = array<i64: 2, 5>}, {transform_indices = @transform_1, window_bounds = array<i64: 1, 24, 128>}, {transform_indices = @transform_2, window_bounds = array<i64: 1, 24, 128>}, {transform_indices = @transform_3, window_bounds = array<i64: 1, 24, 128>}, {transform_indices = @transform_4, window_bounds = array<i64: 1, 1, 1>}, {transform_indices = @transform_5, window_bounds = array<i64: 1, 1, 1>}]} {
    %c0_i32 = arith.constant 0 : i32
    %0 = arith.cmpi eq, %arg1, %c0_i32 : i32
    %1 = arith.extui %0 : i1 to i32
    %c0_i32_0 = arith.constant 0 : i32
    %2 = arith.cmpi ne, %1, %c0_i32_0 : i32
    scf.if %2 {
      %cst_50 = arith.constant 0.000000e+00 : f32
      %c0_51 = arith.constant 0 : index
      %90 = memref.load %arg8[%c0_51] : memref<2xf32, #tpu.memory_space<smem>>
      memref.store %cst_50, %arg8[%c0_51] : memref<2xf32, #tpu.memory_space<smem>>
      %cst_52 = arith.constant 0.000000e+00 : f32
      %c1_53 = arith.constant 1 : index
      %91 = memref.load %arg8[%c1_53] : memref<2xf32, #tpu.memory_space<smem>>
      memref.store %cst_52, %arg8[%c1_53] : memref<2xf32, #tpu.memory_space<smem>>
    } else {
    }
    %c0 = arith.constant 0 : index
    %c0_1 = arith.constant 0 : index
    %c0_2 = arith.constant 0 : index
    %3 = vector.load %arg3[%c0, %c0_1, %c0_2] : memref<1x24x128xf32, #tpu.memory_space<vmem>>, vector<1x24x124xf32>
    %4 = vector.shape_cast %3 : vector<1x24x124xf32> to vector<24x124xf32>
    %c1 = arith.constant 1 : index
    %c0_3 = arith.constant 0 : index
    %5 = memref.load %arg2[%c1, %c0_3] : memref<2x5xf32, #tpu.memory_space<smem>>
    %6 = vector.broadcast %5 : f32 to vector<24x124xf32>
    %7 = arith.mulf %6, %4 : vector<24x124xf32>
    %cst = arith.constant 0.000000e+00 : f32
    %8 = vector.broadcast %cst : f32 to vector<24x124xf32>
    %9 = arith.addf %8, %7 : vector<24x124xf32>
    %c0_4 = arith.constant 0 : index
    %c0_5 = arith.constant 0 : index
    %c1_6 = arith.constant 1 : index
    %10 = vector.load %arg3[%c0_4, %c0_5, %c1_6] : memref<1x24x128xf32, #tpu.memory_space<vmem>>, vector<1x24x124xf32>
    %11 = vector.shape_cast %10 : vector<1x24x124xf32> to vector<24x124xf32>
    %c1_7 = arith.constant 1 : index
    %c1_8 = arith.constant 1 : index
    %12 = memref.load %arg2[%c1_7, %c1_8] : memref<2x5xf32, #tpu.memory_space<smem>>
    %13 = vector.broadcast %12 : f32 to vector<24x124xf32>
    %14 = arith.mulf %13, %11 : vector<24x124xf32>
    %cst_9 = arith.constant 0.000000e+00 : f32
    %15 = vector.broadcast %cst_9 : f32 to vector<24x124xf32>
    %16 = arith.addf %15, %14 : vector<24x124xf32>
    %c0_10 = arith.constant 0 : index
    %c0_11 = arith.constant 0 : index
    %c2 = arith.constant 2 : index
    %17 = vector.load %arg3[%c0_10, %c0_11, %c2] : memref<1x24x128xf32, #tpu.memory_space<vmem>>, vector<1x24x124xf32>
    %18 = vector.shape_cast %17 : vector<1x24x124xf32> to vector<24x124xf32>
    %c1_12 = arith.constant 1 : index
    %c2_13 = arith.constant 2 : index
    %19 = memref.load %arg2[%c1_12, %c2_13] : memref<2x5xf32, #tpu.memory_space<smem>>
    %20 = vector.broadcast %19 : f32 to vector<24x124xf32>
    %21 = arith.mulf %20, %18 : vector<24x124xf32>
    %22 = arith.addf %9, %21 : vector<24x124xf32>
    %c0_14 = arith.constant 0 : index
    %c0_15 = arith.constant 0 : index
    %c3 = arith.constant 3 : index
    %23 = vector.load %arg3[%c0_14, %c0_15, %c3] : memref<1x24x128xf32, #tpu.memory_space<vmem>>, vector<1x24x124xf32>
    %24 = vector.shape_cast %23 : vector<1x24x124xf32> to vector<24x124xf32>
    %c1_16 = arith.constant 1 : index
    %c3_17 = arith.constant 3 : index
    %25 = memref.load %arg2[%c1_16, %c3_17] : memref<2x5xf32, #tpu.memory_space<smem>>
    %26 = vector.broadcast %25 : f32 to vector<24x124xf32>
    %27 = arith.mulf %26, %24 : vector<24x124xf32>
    %28 = arith.addf %16, %27 : vector<24x124xf32>
    %c0_18 = arith.constant 0 : index
    %c0_19 = arith.constant 0 : index
    %c4 = arith.constant 4 : index
    %29 = vector.load %arg3[%c0_18, %c0_19, %c4] : memref<1x24x128xf32, #tpu.memory_space<vmem>>, vector<1x24x124xf32>
    %30 = vector.shape_cast %29 : vector<1x24x124xf32> to vector<24x124xf32>
    %c1_20 = arith.constant 1 : index
    %c4_21 = arith.constant 4 : index
    %31 = memref.load %arg2[%c1_20, %c4_21] : memref<2x5xf32, #tpu.memory_space<smem>>
    %32 = vector.broadcast %31 : f32 to vector<24x124xf32>
    %33 = arith.mulf %32, %30 : vector<24x124xf32>
    %34 = arith.addf %22, %33 : vector<24x124xf32>
    %35 = arith.addf %34, %28 : vector<24x124xf32>
    %cst_22 = arith.constant 0.000000e+00 : f32
    %36 = vector.broadcast %cst_22 : f32 to vector<16x124xf32>
    %cst_23 = arith.constant 0.000000e+00 : f32
    %37 = vector.broadcast %cst_23 : f32 to vector<16x124xf32>
    %c0_24 = arith.constant 0 : index
    %c0_25 = arith.constant 0 : index
    %38 = memref.load %arg2[%c0_24, %c0_25] : memref<2x5xf32, #tpu.memory_space<smem>>
    %39 = vector.extract_strided_slice %35 {offsets = [0, 0], sizes = [16, 124], strides = [1, 1]} : vector<24x124xf32> to vector<16x124xf32>
    %40 = vector.broadcast %38 : f32 to vector<16x124xf32>
    %41 = arith.mulf %40, %39 : vector<16x124xf32>
    %42 = arith.addf %36, %41 : vector<16x124xf32>
    %c0_26 = arith.constant 0 : index
    %c1_27 = arith.constant 1 : index
    %43 = memref.load %arg2[%c0_26, %c1_27] : memref<2x5xf32, #tpu.memory_space<smem>>
    %44 = vector.extract_strided_slice %35 {offsets = [1, 0], sizes = [16, 124], strides = [1, 1]} : vector<24x124xf32> to vector<16x124xf32>
    %45 = vector.broadcast %43 : f32 to vector<16x124xf32>
    %46 = arith.mulf %45, %44 : vector<16x124xf32>
    %47 = arith.addf %37, %46 : vector<16x124xf32>
    %c0_28 = arith.constant 0 : index
    %c2_29 = arith.constant 2 : index
    %48 = memref.load %arg2[%c0_28, %c2_29] : memref<2x5xf32, #tpu.memory_space<smem>>
    %49 = vector.extract_strided_slice %35 {offsets = [2, 0], sizes = [16, 124], strides = [1, 1]} : vector<24x124xf32> to vector<16x124xf32>
    %50 = vector.broadcast %48 : f32 to vector<16x124xf32>
    %51 = arith.mulf %50, %49 : vector<16x124xf32>
    %52 = arith.addf %42, %51 : vector<16x124xf32>
    %c0_30 = arith.constant 0 : index
    %c3_31 = arith.constant 3 : index
    %53 = memref.load %arg2[%c0_30, %c3_31] : memref<2x5xf32, #tpu.memory_space<smem>>
    %54 = vector.extract_strided_slice %35 {offsets = [3, 0], sizes = [16, 124], strides = [1, 1]} : vector<24x124xf32> to vector<16x124xf32>
    %55 = vector.broadcast %53 : f32 to vector<16x124xf32>
    %56 = arith.mulf %55, %54 : vector<16x124xf32>
    %57 = arith.addf %47, %56 : vector<16x124xf32>
    %c0_32 = arith.constant 0 : index
    %c4_33 = arith.constant 4 : index
    %58 = memref.load %arg2[%c0_32, %c4_33] : memref<2x5xf32, #tpu.memory_space<smem>>
    %59 = vector.extract_strided_slice %35 {offsets = [4, 0], sizes = [16, 124], strides = [1, 1]} : vector<24x124xf32> to vector<16x124xf32>
    %60 = vector.broadcast %58 : f32 to vector<16x124xf32>
    %61 = arith.mulf %60, %59 : vector<16x124xf32>
    %62 = arith.addf %52, %61 : vector<16x124xf32>
    %63 = arith.addf %62, %57 : vector<16x124xf32>
    %c0_34 = arith.constant 0 : index
    %c2_35 = arith.constant 2 : index
    %c2_36 = arith.constant 2 : index
    %64 = vector.load %arg5[%c0_34, %c2_35, %c2_36] : memref<1x24x128xf32, #tpu.memory_space<vmem>>, vector<1x16x124xf32>
    %65 = vector.shape_cast %64 : vector<1x16x124xf32> to vector<16x124xf32>
    %c0_37 = arith.constant 0 : index
    %c2_38 = arith.constant 2 : index
    %c2_39 = arith.constant 2 : index
    %66 = vector.load %arg4[%c0_37, %c2_38, %c2_39] : memref<1x24x128xf32, #tpu.memory_space<vmem>>, vector<1x16x124xf32>
    %67 = vector.shape_cast %66 : vector<1x16x124xf32> to vector<16x124xf32>
    %68 = arith.subf %63, %67 : vector<16x124xf32>
    %69 = arith.mulf %68, %65 : vector<16x124xf32>
    %70 = arith.mulf %69, %69 : vector<16x124xf32>
    %71 = vector.shape_cast %70 : vector<16x124xf32> to vector<1x16x124xf32>
    %cst_40 = arith.constant dense<0.000000e+00> : vector<1xf32>
    %72 = vector.multi_reduction <add>, %71, %cst_40 [1, 2] : vector<1x16x124xf32> to vector<1xf32>
    %73 = vector.shape_cast %72 : vector<1xf32> to vector<1x1x1xf32>
    %74 = vector.extract %73[0, 0, 0] : f32 from vector<1x1x1xf32>
    %cst_41 = arith.constant 0.000000e+00 : f32
    %75 = arith.addf %cst_41, %74 : f32
    %76 = vector.shape_cast %65 : vector<16x124xf32> to vector<1x16x124xf32>
    %cst_42 = arith.constant dense<0.000000e+00> : vector<1xf32>
    %77 = vector.multi_reduction <add>, %76, %cst_42 [1, 2] : vector<1x16x124xf32> to vector<1xf32>
    %78 = vector.shape_cast %77 : vector<1xf32> to vector<1x1x1xf32>
    %79 = vector.extract %78[0, 0, 0] : f32 from vector<1x1x1xf32>
    %cst_43 = arith.constant 0.000000e+00 : f32
    %80 = arith.addf %cst_43, %79 : f32
    %c0_44 = arith.constant 0 : index
    %81 = memref.load %arg8[%c0_44] : memref<2xf32, #tpu.memory_space<smem>>
    %82 = arith.addf %81, %75 : f32
    %c0_45 = arith.constant 0 : index
    %83 = memref.load %arg8[%c0_45] : memref<2xf32, #tpu.memory_space<smem>>
    memref.store %82, %arg8[%c0_45] : memref<2xf32, #tpu.memory_space<smem>>
    %c1_46 = arith.constant 1 : index
    %84 = memref.load %arg8[%c1_46] : memref<2xf32, #tpu.memory_space<smem>>
    %85 = arith.addf %84, %80 : f32
    %c1_47 = arith.constant 1 : index
    %86 = memref.load %arg8[%c1_47] : memref<2xf32, #tpu.memory_space<smem>>
    memref.store %85, %arg8[%c1_47] : memref<2xf32, #tpu.memory_space<smem>>
    %c0_i32_48 = arith.constant 0 : i32
    %87 = arith.cmpi eq, %arg1, %c0_i32_48 : i32
    %88 = arith.extui %87 : i1 to i32
    %c0_i32_49 = arith.constant 0 : i32
    %89 = arith.cmpi ne, %88, %c0_i32_49 : i32
    scf.if %89 {
      %c0_50 = arith.constant 0 : index
      %90 = memref.load %arg8[%c0_50] : memref<2xf32, #tpu.memory_space<smem>>
      %91 = vector.broadcast %90 : f32 to vector<1x1x1xf32>
      %c0_51 = arith.constant 0 : index
      %c0_52 = arith.constant 0 : index
      %c0_53 = arith.constant 0 : index
      %92 = vector.load %arg6[%c0_51, %c0_52, %c0_53] : memref<1x1x1xf32, #tpu.memory_space<vmem>>, vector<1x1x1xf32>
      tpu.vector_store %arg6[%c0_51, %c0_52, %c0_53], %91 {strides = array<i32>} : memref<1x1x1xf32, #tpu.memory_space<vmem>>, vector<1x1x1xf32>,
      %c1_54 = arith.constant 1 : index
      %93 = memref.load %arg8[%c1_54] : memref<2xf32, #tpu.memory_space<smem>>
      %94 = vector.broadcast %93 : f32 to vector<1x1x1xf32>
      %c0_55 = arith.constant 0 : index
      %c0_56 = arith.constant 0 : index
      %c0_57 = arith.constant 0 : index
      %95 = vector.load %arg7[%c0_55, %c0_56, %c0_57] : memref<1x1x1xf32, #tpu.memory_space<vmem>>, vector<1x1x1xf32>
      tpu.vector_store %arg7[%c0_55, %c0_56, %c0_57], %94 {strides = array<i32>} : memref<1x1x1xf32, #tpu.memory_space<vmem>>, vector<1x1x1xf32>,
    } else {
    }
    return
  }
  func.func @transform_0(%arg0: i32, %arg1: i32) -> (i32, i32) {
    %c0_i32 = arith.constant 0 : i32
    %c0_i32_0 = arith.constant 0 : i32
    %c0_i32_1 = arith.constant 0 : i32
    return %c0_i32, %c0_i32_0 : i32, i32
  }
  func.func @transform_1(%arg0: i32, %arg1: i32) -> (i32, i32, i32) {
    %c1_i32 = arith.constant 1 : i32
    %0 = arith.muli %arg0, %c1_i32 : i32
    %1 = arith.addi %0, %arg1 : i32
    %c0_i32 = arith.constant 0 : i32
    %c0_i32_0 = arith.constant 0 : i32
    %c0_i32_1 = arith.constant 0 : i32
    return %1, %c0_i32, %c0_i32_0 : i32, i32, i32
  }
  func.func @transform_2(%arg0: i32, %arg1: i32) -> (i32, i32, i32) {
    %c1_i32 = arith.constant 1 : i32
    %0 = arith.muli %arg0, %c1_i32 : i32
    %1 = arith.addi %0, %arg1 : i32
    %c0_i32 = arith.constant 0 : i32
    %c0_i32_0 = arith.constant 0 : i32
    %c0_i32_1 = arith.constant 0 : i32
    return %1, %c0_i32, %c0_i32_0 : i32, i32, i32
  }
  func.func @transform_3(%arg0: i32, %arg1: i32) -> (i32, i32, i32) {
    %c1_i32 = arith.constant 1 : i32
    %0 = arith.muli %arg0, %c1_i32 : i32
    %1 = arith.addi %0, %arg1 : i32
    %c0_i32 = arith.constant 0 : i32
    %c0_i32_0 = arith.constant 0 : i32
    %c0_i32_1 = arith.constant 0 : i32
    return %1, %c0_i32, %c0_i32_0 : i32, i32, i32
  }
  func.func @transform_4(%arg0: i32, %arg1: i32) -> (i32, i32, i32) {
    %c0_i32 = arith.constant 0 : i32
    %c0_i32_0 = arith.constant 0 : i32
    %c0_i32_1 = arith.constant 0 : i32
    return %arg0, %c0_i32, %c0_i32_0 : i32, i32, i32
  }
  func.func @transform_5(%arg0: i32, %arg1: i32) -> (i32, i32, i32) {
    %c0_i32 = arith.constant 0 : i32
    %c0_i32_0 = arith.constant 0 : i32
    %c0_i32_1 = arith.constant 0 : i32
    return %arg0, %c0_i32, %c0_i32_0 : i32, i32, i32
  }
}

</mosaic_0001>

<bundles_post_ra>
// kernel: tpu_custom_call.1
= control target key start
LH: loop header
LB: loop body
LE: loop exit
PB: predicated region body
PF: predicated region fallthrough
CT: control target
= control target key end

     0   :  { %11 = vsyncpa [#allocation6], 0  ;;  %s611_s0 = inlined_call_operand.hbm [shape: f32[2,5], index: 0, kind: input, shape index: {}]   ;;  %s612_s1 = inlined_call_operand.hbm [shape: f32[1,24,128], index: 1, kind: input, shape index: {}]   ;;  %s613_s2 = inlined_call_operand.hbm [shape: f32[1,24,128], index: 2, kind: input, shape index: {}]   ;;  %s614_s3 = inlined_call_operand.hbm [shape: f32[1,24,128], index: 3, kind: input, shape index: {}]   ;;  %s615_s4 = inlined_call_operand.hbm [shape: f32[1,1,1], index: 4, kind: output, shape index: {0}]   ;;  %s616_s5 = inlined_call_operand.hbm [shape: f32[1,1,1], index: 5, kind: output, shape index: {1}]  }
   0x1   :  { %12 = vsyncpa [#allocation4], 0 }
   0x2   :  { %13 = vsyncpa [#allocation9], 0 }
   0x3   :  { %14 = vsyncpa [#allocation5], 0 }
   0x4   :  { %15 = vsyncpa [#allocation13], 0  ;;  %s518_s18 = smov [#allocation8]   ;;  %s519_s20 = smov [#allocation7]  }
   0x5   :  { %s49_s19 = sshll.u32 %s518_s18, 4  ;;  %s33_s21 = sshll.u32 %s519_s20, 4  ;;  %s50_s19 = int_to_ptr.vmem [resolvable:$true] %s49_s19  ;;  %s34_s21 = int_to_ptr.vmem [resolvable:$true] %s33_s21 }
   0x6   :  { %s408_s22 = scalar_lea.vmem %s50_s19, 384  ;;  %p413_p1 = scmp.lt.s32.totalorder %s50_s19, %s50_s19 }
   0x7   :  { %p409_p0 = scmp.ne.s32.totalorder %s50_s19, %s408_s22  ;;  %p414_p2 = scmp.lt.s32.totalorder %s408_s22, %s408_s22 }
   0x9   :  { %p415_p3 = por %p414_p2, %p413_p1 }
   0xb   :  { %p416_p4 = pnand %p415_p3, %p409_p0 }
   0xd   :  { %419 = shalt.err (!%p416_p4)
}
   0xe   :  { %s520_s23 = smov 128   ;;  %s521_s24 = smov 8  }
   0xf   :  { %55 = dma.hbm_to_vmem [thread:$0]  %s613_s2, 384, %s50_s19, [#allocation9], %s520_s23, %s520_s23, %s521_s24  }
  0x10   :  { %s522_s27 = smov [#allocation3]   ;;  %s436_s30 = scalar_lea.vmem %s34_s21, 384 }
  0x11   :  { %23 = dma.hbm_to_smem %s611_s0, 32, %s522_s27, [#allocation6]  }
  0x12   :  { %p437_p5 = scmp.ne.s32.totalorder %s34_s21, %s436_s30  ;;  %p441_p6 = scmp.lt.s32.totalorder %s34_s21, %s34_s21 }
  0x13   :  { %p442_p7 = scmp.lt.s32.totalorder %s436_s30, %s436_s30 }
  0x15   :  { %p443_p8 = por %p442_p7, %p441_p6 }
  0x17   :  { %p444_p9 = pnand %p443_p8, %p437_p5 }
  0x19   :  { %447 = shalt.err (!%p444_p9)
}
  0x1a   :  { %39 = dma.hbm_to_vmem [thread:$0]  %s612_s1, 384, %s34_s21, [#allocation4], %s520_s23, %s520_s23, %s521_s24  }
  0x1b   :  { %s523_s8 = smov [#allocation10]  }
  0x1c   :  { %s65_s9 = sshll.u32 %s523_s8, 4  ;;  %s66_s9 = int_to_ptr.vmem [resolvable:$true] %s65_s9 }
  0x1d   :  { %s456_s2 = scalar_lea.vmem %s66_s9, 384  ;;  %p461_p11 = scmp.lt.s32.totalorder %s66_s9, %s66_s9 }
  0x1e   :  { %p457_p10 = scmp.ne.s32.totalorder %s66_s9, %s456_s2  ;;  %p462_p12 = scmp.lt.s32.totalorder %s456_s2, %s456_s2 }
  0x20   :  { %p463_p13 = por %p462_p12, %p461_p11 }
  0x22   :  { %p464_p0 = pnand %p463_p13, %p457_p10 }
  0x24   :  { %467 = shalt.err (!%p464_p0)
}
  0x25   :  { %71 = dma.hbm_to_vmem [thread:$0]  %s614_s3, 384, %s66_s9, [#allocation9], %s520_s23, %s520_s23, %s521_s24  }
  0x26   :  { %508 = dma.done.wait [#allocation6], 32  }
  0x27   :  { %509 = vsyncadd [#allocation6], 4294967264 }
  0x28   :  { %510 = dma.done.wait [#allocation4], 384  }
  0x29   :  { %511 = vsyncadd [#allocation4], 4294966912 }
  0x2a   :  { %512 = dma.done.wait [#allocation9], 768  }
  0x2b   :  { %513 = vsyncadd [#allocation9], 4294966528 }
  0x2c   :  { %84 = sfence }
  0x2d   :  { %s377_s1 = sld [smem:[#allocation3 + $0x83]]  ;;  %v96_v0 = vld [vmem:[#allocation7] sm:$0xff]  ;;  %v571_v1 = vld [vmem:[#allocation7 + $0x10] sm:$0xff]  ;;  %v97_v3 = vld [vmem:[#allocation7 + $0x8] sm:$0xff]  ;;  %s524_s3 = smov 126   ;;  %vm212_vm0 = vcmask 1045504  }
  0x2e   :  { %s376_s11 = sld [smem:[#allocation3 + $0x82]]  ;;  %s525_s13 = smov 124   ;;  %v274_v25 = vld [vmem:[#allocation8 + $0x2] sm:$0xff]  ;;  %v275_v26 = vld [vmem:[#allocation8 + $0xa] sm:$0xff]  ;;  %v272_v27 = vld [vmem:[#allocation10 + $0x2] sm:$0xff]  ;;  %vm249_vm1 = vcmask 1043456  }
  0x2f   :  { %s378_s12 = sld [smem:[#allocation3 + $0x84]]  ;;  %s526_s15 = smov 127   ;;  %v273_v28 = vld [vmem:[#allocation10 + $0xa] sm:$0xff]  ;;  %vm262_vm2 = vcmask 1046528   ;;  %vm298_vm3 = vcmask 1014784   ;;  %vm338_vm4 = vcmask 0  }
  0x30   :  { %s375_s14 = sld [smem:[#allocation3 + $0x81]]  ;;  %s527_s22 = smov [#allocation11]  }
  0x31   :  { %s374_s16 = sld [smem:[#allocation3 + $0x80]]  ;;  %s349_s23 = sshll.u32 %s527_s22, 4  ;;  %s350_s23 = int_to_ptr.vmem [resolvable:$true] %s349_s23 }
  0x32   :  { %s379_s17 = sld [smem:[#allocation3 + $0x1]]  ;;  %s528_s24 = smov [#allocation12]  }
  0x33   :  { %v136_v2 = vstv %s377_s1  ;;  %s380_s18 = sld [smem:[#allocation3 + $0x2]]  ;;  %s359_s25 = sshll.u32 %s528_s24, 4  ;;  %s360_s25 = int_to_ptr.vmem [resolvable:$true] %s359_s25 }
  0x34   :  { %v137_v4 = vmul.f32 %v136_v2, %v96_v0  ;;  %v139_v5 = vmul.f32 %v136_v2, %v571_v1  ;;  %v116_v6 = vstv %s376_s11  ;;  %v138_v7 = vmul.f32 %v136_v2, %v97_v3  ;;  %s381_s19 = sld [smem:[#allocation3 + $0x3]]  ;;  %s468_s28 = scalar_lea.vmem %s350_s23, 16 }
  0x35   :  { %v117_v8 = vmul.f32 %v116_v6, %v96_v0  ;;  %v118_v9 = vmul.f32 %v116_v6, %v97_v3  ;;  %v119_v10 = vmul.f32 %v116_v6, %v571_v1  ;;  %v156_v11 = vstv %s378_s12  ;;  %s382_s20 = sld [smem:[#allocation3 + $0x4]]  ;;  %p469_p1 = scmp.ne.s32.totalorder %s350_s23, %s468_s28 }
  0x36   :  { %143 = vrot.lane.b32.xlu0 %v137_v4, %s524_s3  ;;  %147 = vrot.lane.b32.xlu1 %v139_v5, %s524_s3  ;;  %v157_v12 = vmul.f32 %v156_v11, %v96_v0  ;;  %v158_v13 = vmul.f32 %v156_v11, %v97_v3  ;;  %v159_v14 = vmul.f32 %v156_v11, %v571_v1  ;;  %v108_v15 = vstv %s375_s14  ;;  %s587_s21 = sld [smem:[#allocation3]]  ;;  %s472_s29 = scalar_lea.vmem %s350_s23, 32 }
  0x37   :  { %v109_v16 = vmul.f32 %v108_v15, %v96_v0  ;;  %v111_v17 = vmul.f32 %v108_v15, %v571_v1  ;;  %v110_v21 = vmul.f32 %v108_v15, %v97_v3  ;;  %v100_v30 = vstv %s374_s16  ;;  %p473_p2 = scmp.lt.s32.totalorder %s350_s23, %s350_s23  ;;  %p474_p3 = scmp.lt.s32.totalorder %s472_s29, %s468_s28 }
  0x38   :  { %v101_v33 = vmul.f32 %v100_v30, %v96_v0  ;;  %v102_v35 = vmul.f32 %v100_v30, %v97_v3  ;;  %v103_v37 = vmul.f32 %v100_v30, %v571_v1  ;;  %v197_v48 = vstv %s379_s17 }
  0x39   :  { %v205_v44 = vstv %s380_s18  ;;  %p475_p4 = por %p474_p3, %p473_p2 }
  0x3a   :  { %145 = vrot.lane.b32.xlu0 %v138_v7, %s524_s3  ;;  %123 = vrot.lane.b32.xlu1 %v117_v8, %s524_s3  ;;  %v223_v45 = vstv %s381_s19 }
  0x3b   :  { %v242_v47 = vstv %s382_s20  ;;  %p476_p5 = pnand %p475_p4, %p469_p1 }
  0x3c   :  { %v191_v49 = vstv %s587_s21 }
  0x3e   :  { %125 = vrot.lane.b32.xlu0 %v118_v9, %s524_s3  ;;  %127 = vrot.lane.b32.xlu1 %v119_v10, %s524_s3 }
  0x42   :  { %163 = vrot.lane.b32.xlu0 %v157_v12, %s525_s13  ;;  %165 = vrot.lane.b32.xlu1 %v158_v13, %s525_s13 }
  0x46   :  { %167 = vrot.lane.b32.xlu0 %v159_v14, %s525_s13 }
  0xa8   :  { %v144_v18 = vpop.permute.xlu0 %143  ;;  %v148_v19 = vpop.permute.xlu1 %147 }
  0xa9   :  { %v152_v20 = vadd.f32 %v144_v18, %v109_v16  ;;  %v154_v22 = vadd.f32 %v148_v19, %v111_v17 }
  0xab   :  { %178 = vrot.lane.b32.xlu1 %v152_v20, %s526_s15 }
  0xac   :  { %v146_v23 = vpop.permute.xlu0 %145  ;;  %v124_v29 = vpop.permute.xlu1 %123 }
  0xad   :  { %v153_v24 = vadd.f32 %v146_v23, %v110_v21  ;;  %v132_v36 = vadd.f32 %v124_v29, %v101_v33 }
  0xaf   :  { %180 = vrot.lane.b32.xlu0 %v153_v24, %s526_s15  ;;  %182 = vrot.lane.b32.xlu1 %v154_v22, %s526_s15 }
  0xb0   :  { %v126_v31 = vpop.permute.xlu0 %125  ;;  %v128_v32 = vpop.permute.xlu1 %127 }
  0xb1   :  { %v133_v39 = vadd.f32 %v126_v31, %v102_v35  ;;  %v134_v41 = vadd.f32 %v128_v32, %v103_v37 }
  0xb3   :  { %278 = vrot.lane.b32.xlu0 %v274_v25, %s524_s3  ;;  %280 = vrot.lane.b32.xlu1 %v275_v26, %s524_s3 }
  0xb4   :  { %v164_v34 = vpop.permute.xlu0 %163  ;;  %v166_v38 = vpop.permute.xlu1 %165 }
  0xb5   :  { %v172_v40 = vadd.f32 %v164_v34, %v132_v36  ;;  %v173_v51 = vadd.f32 %v166_v38, %v133_v39 }
  0xb7   :  { %288 = vrot.lane.b32.xlu0 %v272_v27, %s524_s3  ;;  %290 = vrot.lane.b32.xlu1 %v273_v28, %s524_s3 }
  0xb8   :  { %v168_v42 = vpop.permute.xlu0 %167 }
  0xb9   :  { %v174_v50 = vadd.f32 %v168_v42, %v134_v41 }
 0x11d   :  { %v179_v43 = vpop.permute.xlu1 %178 }
 0x11e   :  { %v187_v46 = vadd.f32 %v179_v43, %v172_v40 }
 0x120   :  { %v224_v52 = vmul.f32 %v223_v45, %v187_v46  ;;  %v206_v53 = vmul.f32 %v205_v44, %v187_v46  ;;  %v243_v56 = vmul.f32 %v242_v47, %v187_v46  ;;  %v192_v60 = vmul.f32 %v191_v49, %v187_v46 }
 0x121   :  { %v181_v54 = vpop.permute.xlu0 %180  ;;  %v183_v55 = vpop.permute.xlu1 %182  ;;  %v198_v61 = vmul.f32 %v197_v48, %v187_v46 }
 0x122   :  { %v188_v57 = vadd.f32 %v181_v54, %v173_v51  ;;  %v189_v58 = vadd.f32 %v183_v55, %v174_v50  ;;  %v230_v59 = vrot.slane %v224_v52, 2  ;;  %v213_v1 = vrot.slane %v206_v53, 2 }
 0x123   :  { %v250_v6 = vrot.slane %v243_v56, 4 }
 0x124   :  { %v225_v62 = vmul.f32 %v223_v45, %v188_v57  ;;  %v208_v63 = vmul.f32 %v205_v44, %v189_v58  ;;  %v226_v0 = vmul.f32 %v223_v45, %v189_v58  ;;  %v245_v2 = vmul.f32 %v242_v47, %v189_v58 }
 0x125   :  { %v279_v3 = vpop.permute.xlu0 %278  ;;  %v207_v4 = vmul.f32 %v205_v44, %v188_v57  ;;  %v244_v5 = vmul.f32 %v242_v47, %v188_v57  ;;  %v281_v7 = vpop.permute.xlu1 %280  ;;  %v200_v9 = vmul.f32 %v197_v48, %v189_v58  ;;  %v199_v13 = vmul.f32 %v197_v48, %v188_v57 }
 0x126   :  { %v231_v8 = vrot.slane %v225_v62, 2  ;;  %v216_v10 = vrot.slane %v208_v63, 2  ;;  %v233_v11 = vrot.slane %v226_v0, 2  ;;  %v253_v12 = vrot.slane %v245_v2, 4 }
 0x127   :  { %v214_v14 = vrot.slane %v207_v4, 2  ;;  %v251_v15 = vrot.slane %v244_v5, 4  ;;  %v193_v18 = vmul.f32 %v191_v49, %v188_v57 }
 0x128   :  { %v232_v16 = vsel %vm212_vm0, %v230_v59, %v231_v8  ;;  %v234_v17 = vsel %vm212_vm0, %v231_v8, %v233_v11  ;;  %v240_v19 = vadd.f32 %v233_v11, %v200_v9 }
 0x129   :  { %v215_v20 = vsel %vm212_vm0, %v213_v1, %v214_v14  ;;  %v238_v21 = vadd.f32 %v232_v16, %v198_v61  ;;  %v239_v22 = vadd.f32 %v234_v17, %v199_v13  ;;  %v252_v23 = vsel %vm249_vm1, %v250_v6, %v251_v15  ;;  %v289_v24 = vpop.permute.xlu0 %288  ;;  %v291_v25 = vpop.permute.xlu1 %290 }
 0x12a   :  { %v220_v26 = vadd.f32 %v215_v20, %v192_v60  ;;  %v217_v27 = vsel %vm212_vm0, %v214_v14, %v216_v10  ;;  %v254_v28 = vsel %vm249_vm1, %v251_v15, %v253_v12  ;;  %v266_v29 = vrot.slane %v240_v19, 1 }
 0x12b   :  { %v263_v30 = vrot.slane %v238_v21, 1  ;;  %v264_v31 = vrot.slane %v239_v22, 1  ;;  %v221_v32 = vadd.f32 %v217_v27, %v193_v18  ;;  %v312_v33 = vsel %vm298_vm3, %v289_v24, 0.0 }
 0x12c   :  { %v257_v34 = vadd.f32 %v252_v23, %v220_v26  ;;  %v313_v35 = vsel %vm298_vm3, %v291_v25, 0.0 }
 0x12d   :  { %v265_v36 = vsel %vm262_vm2, %v263_v30, %v264_v31  ;;  %v258_v37 = vadd.f32 %v254_v28, %v221_v32  ;;  %v267_v38 = vsel %vm262_vm2, %v264_v31, %v266_v29  ;;  %v314_v39 = vadd.f32 %v313_v35, %v312_v33 }
 0x12e   :  { %v270_v40 = vadd.f32 %v265_v36, %v257_v34 }
 0x12f   :  { %v271_v41 = vadd.f32 %v267_v38, %v258_v37  ;;  %315 = vadd.xlane.f32.xlu1 %v314_v39 }
 0x130   :  { %v284_v42 = vsub.f32 %v270_v40, %v279_v3 }
 0x131   :  { %v285_v43 = vsub.f32 %v271_v41, %v281_v7 }
 0x132   :  { %v294_v44 = vmul.f32 %v289_v24, %v284_v42 }
 0x133   :  { %v295_v45 = vmul.f32 %v291_v25, %v285_v43 }
 0x134   :  { %v296_v46 = vmul.f32 %v294_v44, %v294_v44 }
 0x135   :  { %v297_v47 = vmul.f32 %v295_v45, %v295_v45 }
 0x136   :  { %v299_v48 = vsel %vm298_vm3, %v296_v46, 0.0 }
 0x137   :  { %v300_v49 = vsel %vm298_vm3, %v297_v47, 0.0 }
 0x138   :  { %v301_v50 = vadd.f32 %v300_v49, %v299_v48 }
 0x13a   :  { %302 = vadd.xlane.f32.xlu0 %v301_v50 }
 0x1b8   :  { %v316_v51 = vpop.xlane.xlu1 %315 }
 0x1b9   :  { %v317_v52 = vrot.slane %v316_v51, 4 }
 0x1bb   :  { %v318_v53 = vadd.f32 %v317_v52, %v316_v51 }
 0x1bd   :  { %v319_v54 = vrot.slane %v318_v53, 2 }
 0x1bf   :  { %v320_v58 = vadd.f32 %v319_v54, %v318_v53 }
 0x1c1   :  { %v321_v61 = vrot.slane %v320_v58, 1 }
 0x1c3   :  { %v303_v55 = vpop.xlane.xlu0 %302  ;;  %v322_v0 = vadd.f32 %v321_v61, %v320_v58 }
 0x1c4   :  { %v304_v56 = vrot.slane %v303_v55, 4 }
 0x1c6   :  { %v305_v57 = vadd.f32 %v304_v56, %v303_v55 }
 0x1c8   :  { %v306_v59 = vrot.slane %v305_v57, 2 }
 0x1ca   :  { %v307_v60 = vadd.f32 %v306_v59, %v305_v57 }
 0x1cc   :  { %v308_v62 = vrot.slane %v307_v60, 1 }
 0x1ce   :  { %v309_v63 = vadd.f32 %v308_v62, %v307_v60 }
 0x1d0   :  { %385 = vpush %v309_v63 }
 0x1d1   :  { %387 = vpush %v322_v0 }
 0x201   :  { %s386_s26 = spop %385 }
 0x202   :  { %v337_v1 = vstv %s386_s26  ;;  %s388_s27 = spop %387 }
 0x203   :  { %v341_v2 = vstv %s388_s27  ;;  %339 = vst.msk [vmem:[#allocation11] sm:$0x1] %vm338_vm4, %v337_v1 }
 0x204   :  { %479 = shalt.err (!%p476_p5)
}
 0x205   :  { %352 = dma.vmem_to_hbm [thread:$0]  %s350_s23, 16, %s615_s4, [#allocation5]   ;;  %342 = vst.msk [vmem:[#allocation12] sm:$0x1] %vm338_vm4, %v341_v2 }
 0x206   :  { %s488_s7 = scalar_lea.vmem %s360_s25, 16  ;;  %s492_s8 = scalar_lea.vmem %s360_s25, 32 }
 0x207   :  { %p489_p6 = scmp.ne.s32.totalorder %s360_s25, %s488_s7  ;;  %p493_p7 = scmp.lt.s32.totalorder %s360_s25, %s360_s25 }
 0x208   :  { %p494_p8 = scmp.lt.s32.totalorder %s492_s8, %s488_s7 }
 0x20a   :  { %p495_p9 = por %p494_p8, %p493_p7 }
 0x20c   :  { %p496_p10 = pnand %p495_p9, %p489_p6 }
 0x20e   :  { %499 = shalt.err (!%p496_p10)
}
 0x20f   :  { %362 = dma.vmem_to_hbm [thread:$0]  %s360_s25, 16, %s616_s5, [#allocation13]  }
 0x210   :  { %514 = dma.done.wait [#allocation5], 16  }
 0x211   :  { %515 = vsyncadd [#allocation5], 4294967280 }
 0x212   :  { %516 = dma.done.wait [#allocation13], 16  }
 0x213   :  { %517 = vsyncadd [#allocation13], 4294967280 }
 0x214   :  { %369 = vsyncpa [#allocation4], 1 }
 0x215   :  { %370 = vsyncpa [#allocation9], 1 }
 0x216   :  { %371 = vsyncpa [#allocation5], 1 }
 0x217   :  { %372 = vsyncpa [#allocation13], 1 }
 0x218   :  { %373 = vsyncpa [#allocation6], 1 }

</bundles_post_ra>
